<compile_context>
chip_gen: v7x
topology: tpu7x:2x2x1
jax: 0.10.0
libtpu: 0.0.40
codegen_flags: <defaults>
</compile_context>

<pallas_src>
import functools

import jax
import jax.numpy as jnp
from jax.experimental import pallas as pl
from jax.experimental.pallas import tpu as pltpu

_LANE = 128
_SUBLANE = 8


def _round_up(x, m):
    return ((x + m - 1) // m) * m


def _focal_loss_kernel(logits_ref, targets_ref, out_ref, acc_ref, *,
                       gamma, num_classes):
    # logits_ref : (C, R, 128)   logits (f32 or bf16), batch dense on (R, 128)
    # targets_ref: (R, 128)      int8/int32 class ids; -1 marks padded samples
    # out_ref    : (1, 8, 128)   per-partial f32 output slab (value broadcast)
    # acc_ref    : (R, 128)      f32 running per-sample partial sums (scratch)
    i = pl.program_id(1)

    @pl.when(i == 0)
    def _init():
        acc_ref[...] = jnp.zeros_like(acc_ref)

    x = logits_ref[...].astype(jnp.float32)          # (C, R, 128)
    t = targets_ref[...].astype(jnp.int32)           # (R, 128)
    valid = t >= 0                                    # -1 sentinel = padding

    if num_classes == 2:
        # Binary fast path: d = x_target - x_other, ce = softplus(-d),
        # pt = sigmoid(d).  One exp + one log + one reciprocal per sample.
        x0 = x[0]
        x1 = x[1]
        d = jnp.where(t == 0, x0 - x1, x1 - x0)      # (R, 128)
        e = jnp.exp(-jnp.abs(d))                     # in (0, 1]
        inv = pl.reciprocal(1.0 + e, approx=True)
        ce = jnp.maximum(-d, 0.0) + jnp.log(1.0 + e)
        pt = jnp.where(d >= 0.0, 1.0, e) * inv
    else:
        # Stable softmax; the class reduction is elementwise across C slabs.
        m = jnp.max(x, axis=0)                       # (R, 128)
        z = x - m[None]                              # (C, R, 128)
        ez = jnp.exp(z)
        sumexp = jnp.sum(ez, axis=0)                 # (R, 128)
        cls = jax.lax.broadcasted_iota(jnp.int32, x.shape, 0)
        onehot = (cls == t[None]).astype(jnp.float32)
        tgt_z = jnp.sum(z * onehot, axis=0)          # x_t - m
        tgt_ez = jnp.sum(ez * onehot, axis=0)        # exp(x_t - m)
        ce = jnp.log(sumexp) - tgt_z
        pt = tgt_ez * pl.reciprocal(sumexp, approx=True)

    # Clamp guards pt marginally > 1 from the approximate reciprocal.
    w = jnp.maximum(1.0 - pt, 0.0)

    g_is_int = float(gamma) == int(gamma) and 0 <= int(gamma) <= 8
    if g_is_int:
        g = int(gamma)
        if g == 0:
            wg = jnp.ones_like(w)
        else:
            wg = w
            for _ in range(g - 1):                   # static unroll (gamma=2 here)
                wg = wg * w
    else:
        wg = w ** jnp.float32(gamma)                 # rare: pow fallback

    focal = jnp.where(valid, wg * ce, 0.0)
    acc_ref[...] += focal                            # dense (R, 128) add per step

    @pl.when(i == pl.num_programs(1) - 1)
    def _finalize():
        total = jnp.sum(acc_ref[...])
        out_ref[...] = jnp.full(out_ref.shape, total, jnp.float32)


def focal_loss(inputs, targets, alpha=1.0, gamma=2.0, reduction="mean", *,
               logits_layout="nc", num_partials=1, max_block_rows=2048,
               vmem_budget_bytes=8 * 1024 * 1024):
    """Pallas FocalLoss.forward for reduction in {'mean', 'sum'}.

    inputs : (N, C) logits (or (C, N) with logits_layout="cn"), f32 or bf16.
    targets: (N,) integer class indices.
    num_partials: leading "parallel" grid axis size (set 2 on v7x for 2 TCs).
    """
    if reduction not in ("mean", "sum"):
        # TODO(synk): reduction='none' needs a per-sample output BlockSpec.
        raise NotImplementedError("only 'mean' and 'sum' reductions are implemented")
    if logits_layout == "nc":
        n, c = inputs.shape
    elif logits_layout == "cn":
        c, n = inputs.shape
    else:
        raise ValueError("logits_layout must be 'nc' or 'cn'")
    num_partials = max(int(num_partials), 1)

    # --- tile sizing: rows of 128 samples, sized against a conservative VMEM
    # budget (2 pipeline buffers per input + the f32 accumulator), safe on
    # v5e's 16 MiB scoped default as well as v7x's 64 MiB physical VMEM. ---
    tgt_dtype = jnp.int8 if c <= 127 else jnp.int32
    row_align = 32 if tgt_dtype == jnp.int8 else _SUBLANE
    logits_itemsize = jnp.dtype(inputs.dtype).itemsize
    tgt_itemsize = jnp.dtype(tgt_dtype).itemsize
    bytes_per_row = _LANE * (c * logits_itemsize + tgt_itemsize)
    denom = 2 * bytes_per_row + 4 * _LANE            # double-buffered inputs + acc
    r = max(row_align, (vmem_budget_bytes // denom) // row_align * row_align)
    r = min(r, max(row_align, (max_block_rows // row_align) * row_align))

    rows_needed = pl.cdiv(n, _LANE)
    r = min(r, _round_up(rows_needed, row_align))
    r = _round_up(r, row_align)

    blocks = pl.cdiv(rows_needed, r)
    blocks = _round_up(blocks, num_partials)
    bpp = blocks // num_partials                     # inner (reduction) grid size
    n_pad = blocks * r * _LANE
    pad = n_pad - n

    # --- lane-dense relayout.  For logits_layout="cn" the transpose (an extra
    # HBM pass over the logits) is skipped entirely. ---
    logits_cn = inputs.T if logits_layout == "nc" else inputs      # (C, N)
    logits_cn = jnp.pad(logits_cn, ((0, 0), (0, pad)))
    logits_3d = logits_cn.reshape(c, n_pad // _LANE, _LANE)        # (C, rows, 128)

    targets_p = jnp.pad(targets.astype(tgt_dtype), (0, pad), constant_values=-1)
    targets_2d = targets_p.reshape(n_pad // _LANE, _LANE)          # (rows, 128)

    kernel = functools.partial(_focal_loss_kernel, gamma=float(gamma),
                               num_classes=c)

    out = pl.pallas_call(
        kernel,
        out_shape=jax.ShapeDtypeStruct((num_partials, _SUBLANE, _LANE), jnp.float32),
        grid_spec=pltpu.PrefetchScalarGridSpec(
            num_scalar_prefetch=0,
            grid=(num_partials, bpp),
            in_specs=[
                pl.BlockSpec((c, r, _LANE), lambda p, i: (0, p * bpp + i, 0)),
                pl.BlockSpec((r, _LANE), lambda p, i: (p * bpp + i, 0)),
            ],
            out_specs=pl.BlockSpec((1, _SUBLANE, _LANE), lambda p, i: (p, 0, 0)),
            scratch_shapes=[pltpu.VMEM((r, _LANE), jnp.float32)],
        ),
        compiler_params=pltpu.CompilerParams(
            dimension_semantics=("parallel", "arbitrary"),
            vmem_limit_bytes=32 * 1024 * 1024,
        ),
    )(logits_3d, targets_2d)

    total = jnp.sum(out[:, 0, 0]) * jnp.float32(alpha)
    if reduction == "mean":
        total = total / jnp.float32(n)
    return total


def _reference_focal_loss(inputs, targets, alpha, gamma, reduction):
    # Pure-JAX reference mirroring the PyTorch module.
    logp = jax.nn.log_softmax(inputs.astype(jnp.float32), axis=-1)
    ce = -jnp.take_along_axis(logp, targets[:, None].astype(jnp.int32), axis=-1)[:, 0]
    pt = jnp.exp(-ce)
    fl = alpha * (1.0 - pt) ** gamma * ce
    return jnp.mean(fl) if reduction == "mean" else jnp.sum(fl)


if __name__ == "__main__":
    key = jax.random.PRNGKey(0)
    k1, k2, k3, k4, k5, k6 = jax.random.split(key, 6)

    # Case 1: binary gender-classifier head (C == 2 fast path), small batch.
    n1, c1 = 8, 2
    logits1 = jax.random.normal(k1, (n1, c1), dtype=jnp.float32) * 2.0
    targets1 = jax.random.randint(k2, (n1,), 0, c1, dtype=jnp.int32)
    out1 = jax.block_until_ready(
        focal_loss(logits1, targets1, alpha=1.0, gamma=2.0, reduction="mean"))
    ref1 = _reference_focal_loss(logits1, targets1, 1.0, 2.0, "mean")
    assert jnp.allclose(out1, ref1, atol=5e-3, rtol=5e-3), (out1, ref1)

    # Case 2: multi-class, multi-step inner grid, 2 per-core partial sums,
    # ragged tail masked by the -1 sentinel.
    n2, c2 = 9000, 5
    logits2 = jax.random.normal(k3, (n2, c2), dtype=jnp.float32)
    targets2 = jax.random.randint(k4, (n2,), 0, c2, dtype=jnp.int32)
    out2 = jax.block_until_ready(
        focal_loss(logits2, targets2, alpha=0.25, gamma=2.0, reduction="mean",
                   num_partials=2, max_block_rows=32))
    ref2 = _reference_focal_loss(logits2, targets2, 0.25, 2.0, "mean")
    assert jnp.allclose(out2, ref2, atol=5e-3, rtol=5e-3), (out2, ref2)

    # Case 3: bf16 class-major logits (no wrapper transpose), sum reduction.
    n3, c3 = 1000, 3
    logits3 = jax.random.normal(k5, (c3, n3), dtype=jnp.float32).astype(jnp.bfloat16)
    targets3 = jax.random.randint(k6, (n3,), 0, c3, dtype=jnp.int32)
    out3 = jax.block_until_ready(
        focal_loss(logits3, targets3, alpha=1.0, gamma=2.0, reduction="sum",
                   logits_layout="cn"))
    ref3 = _reference_focal_loss(logits3.T.astype(jnp.float32), targets3,
                                 1.0, 2.0, "sum")
    assert jnp.allclose(out3, ref3, atol=5e-2, rtol=5e-3), (out3, ref3)

    print("KERNEL_OK")
</pallas_src>

<mosaic_0001>
module attributes {stable_mosaic.version = 11 : i64} {
  func.func @_focal_loss_kernel(%arg0: i32, %arg1: i32, %arg2: memref<2x32x128xf32, #tpu.memory_space<vmem>>, %arg3: memref<32x128xi8, #tpu.memory_space<vmem>>, %arg4: memref<1x8x128xf32, #tpu.memory_space<vmem>>, %arg5: memref<32x128xf32, #tpu.memory_space<vmem>>) attributes {dimension_semantics = [#tpu.dimension_semantics<parallel>, #tpu.dimension_semantics<arbitrary>], iteration_bounds = array<i64: 1, 1>, scalar_prefetch = 0 : i64, scratch_operands = 1 : i64, tpu.core_type = #tpu.core_type<tc>, window_params = [{transform_indices = @transform_0, window_bounds = array<i64: 2, 32, 128>}, {transform_indices = @transform_1, window_bounds = array<i64: 32, 128>}, {transform_indices = @transform_2, window_bounds = array<i64: 1, 8, 128>}]} {
    %c0_i32 = arith.constant 0 : i32
    %0 = arith.cmpi eq, %arg1, %c0_i32 : i32
    %1 = arith.extui %0 : i1 to i32
    %c0_i32_0 = arith.constant 0 : i32
    %2 = arith.cmpi ne, %1, %c0_i32_0 : i32
    scf.if %2 {
      %cst_22 = arith.constant 0.000000e+00 : f32
      %51 = vector.broadcast %cst_22 : f32 to vector<32x128xf32>
      %c0_23 = arith.constant 0 : index
      %c0_24 = arith.constant 0 : index
      %52 = vector.load %arg5[%c0_23, %c0_24] : memref<32x128xf32, #tpu.memory_space<vmem>>, vector<32x128xf32>
      tpu.vector_store %arg5[%c0_23, %c0_24], %51 {strides = array<i32>} : memref<32x128xf32, #tpu.memory_space<vmem>>, vector<32x128xf32>,
    } else {
    }
    %c0 = arith.constant 0 : index
    %c0_1 = arith.constant 0 : index
    %c0_2 = arith.constant 0 : index
    %3 = vector.load %arg2[%c0, %c0_1, %c0_2] : memref<2x32x128xf32, #tpu.memory_space<vmem>>, vector<2x32x128xf32>
    %c0_3 = arith.constant 0 : index
    %c0_4 = arith.constant 0 : index
    %4 = vector.load %arg3[%c0_3, %c0_4] : memref<32x128xi8, #tpu.memory_space<vmem>>, vector<32x128xi8>
    %5 = arith.extsi %4 : vector<32x128xi8> to vector<32x128xi32>
    %c0_i32_5 = arith.constant 0 : i32
    %6 = vector.broadcast %c0_i32_5 : i32 to vector<32x128xi32>
    %7 = arith.cmpi sge, %5, %6 : vector<32x128xi32>
    %8 = vector.extract_strided_slice %3 {offsets = [0, 0, 0], sizes = [1, 32, 128], strides = [1, 1, 1]} : vector<2x32x128xf32> to vector<1x32x128xf32>
    %9 = vector.shape_cast %8 : vector<1x32x128xf32> to vector<32x128xf32>
    %10 = vector.extract_strided_slice %3 {offsets = [1, 0, 0], sizes = [1, 32, 128], strides = [1, 1, 1]} : vector<2x32x128xf32> to vector<1x32x128xf32>
    %11 = vector.shape_cast %10 : vector<1x32x128xf32> to vector<32x128xf32>
    %c0_i32_6 = arith.constant 0 : i32
    %12 = vector.broadcast %c0_i32_6 : i32 to vector<32x128xi32>
    %13 = arith.cmpi eq, %5, %12 : vector<32x128xi32>
    %14 = arith.subf %9, %11 : vector<32x128xf32>
    %15 = arith.subf %11, %9 : vector<32x128xf32>
    %16 = arith.select %13, %14, %15 : vector<32x128xi1>, vector<32x128xf32>
    %17 = math.absf %16 : vector<32x128xf32>
    %cst = arith.constant 0.000000e+00 : f32
    %18 = vector.broadcast %cst : f32 to vector<32x128xf32>
    %19 = arith.subf %18, %17 : vector<32x128xf32>
    %20 = math.exp %19 : vector<32x128xf32>
    %cst_7 = arith.constant 1.000000e+00 : f32
    %21 = vector.broadcast %cst_7 : f32 to vector<32x128xf32>
    %22 = arith.addf %21, %20 : vector<32x128xf32>
    %23 = tpu.reciprocal %22 {approx = true} : vector<32x128xf32> -> vector<32x128xf32>
    %cst_8 = arith.constant 0.000000e+00 : f32
    %24 = vector.broadcast %cst_8 : f32 to vector<32x128xf32>
    %25 = arith.subf %24, %16 : vector<32x128xf32>
    %cst_9 = arith.constant 0.000000e+00 : f32
    %26 = vector.broadcast %cst_9 : f32 to vector<32x128xf32>
    %27 = arith.maximumf %25, %26 : vector<32x128xf32>
    %cst_10 = arith.constant 1.000000e+00 : f32
    %28 = vector.broadcast %cst_10 : f32 to vector<32x128xf32>
    %29 = arith.addf %28, %20 : vector<32x128xf32>
    %30 = math.log %29 : vector<32x128xf32>
    %31 = arith.addf %27, %30 : vector<32x128xf32>
    %cst_11 = arith.constant 0.000000e+00 : f32
    %32 = vector.broadcast %cst_11 : f32 to vector<32x128xf32>
    %33 = arith.cmpf oge, %16, %32 : vector<32x128xf32>
    %cst_12 = arith.constant 1.000000e+00 : f32
    %34 = vector.broadcast %cst_12 : f32 to vector<32x128xf32>
    %35 = arith.select %33, %34, %20 : vector<32x128xi1>, vector<32x128xf32>
    %36 = arith.mulf %35, %23 : vector<32x128xf32>
    %cst_13 = arith.constant 1.000000e+00 : f32
    %37 = vector.broadcast %cst_13 : f32 to vector<32x128xf32>
    %38 = arith.subf %37, %36 : vector<32x128xf32>
    %cst_14 = arith.constant 0.000000e+00 : f32
    %39 = vector.broadcast %cst_14 : f32 to vector<32x128xf32>
    %40 = arith.maximumf %38, %39 : vector<32x128xf32>
    %41 = arith.mulf %40, %40 : vector<32x128xf32>
    %42 = arith.mulf %41, %31 : vector<32x128xf32>
    %cst_15 = arith.constant 0.000000e+00 : f32
    %43 = vector.broadcast %cst_15 : f32 to vector<32x128xf32>
    %44 = arith.select %7, %42, %43 : vector<32x128xi1>, vector<32x128xf32>
    %c0_16 = arith.constant 0 : index
    %c0_17 = arith.constant 0 : index
    %45 = vector.load %arg5[%c0_16, %c0_17] : memref<32x128xf32, #tpu.memory_space<vmem>>, vector<32x128xf32>
    %46 = arith.addf %45, %44 : vector<32x128xf32>
    %c0_18 = arith.constant 0 : index
    %c0_19 = arith.constant 0 : index
    %47 = vector.load %arg5[%c0_18, %c0_19] : memref<32x128xf32, #tpu.memory_space<vmem>>, vector<32x128xf32>
    tpu.vector_store %arg5[%c0_18, %c0_19], %46 {strides = array<i32>} : memref<32x128xf32, #tpu.memory_space<vmem>>, vector<32x128xf32>,
    %c0_i32_20 = arith.constant 0 : i32
    %48 = arith.cmpi eq, %arg1, %c0_i32_20 : i32
    %49 = arith.extui %48 : i1 to i32
    %c0_i32_21 = arith.constant 0 : i32
    %50 = arith.cmpi ne, %49, %c0_i32_21 : i32
    scf.if %50 {
      %c0_22 = arith.constant 0 : index
      %c0_23 = arith.constant 0 : index
      %51 = vector.load %arg5[%c0_22, %c0_23] : memref<32x128xf32, #tpu.memory_space<vmem>>, vector<32x128xf32>
      %52 = vector.shape_cast %51 : vector<32x128xf32> to vector<1x32x128xf32>
      %cst_24 = arith.constant dense<0.000000e+00> : vector<1xf32>
      %53 = vector.multi_reduction <add>, %52, %cst_24 [1, 2] : vector<1x32x128xf32> to vector<1xf32>
      %54 = vector.shape_cast %53 : vector<1xf32> to vector<1x1x1xf32>
      %55 = vector.extract %54[0, 0, 0] : f32 from vector<1x1x1xf32>
      %56 = vector.broadcast %55 : f32 to vector<1x8x128xf32>
      %c0_25 = arith.constant 0 : index
      %c0_26 = arith.constant 0 : index
      %c0_27 = arith.constant 0 : index
      %57 = vector.load %arg4[%c0_25, %c0_26, %c0_27] : memref<1x8x128xf32, #tpu.memory_space<vmem>>, vector<1x8x128xf32>
      tpu.vector_store %arg4[%c0_25, %c0_26, %c0_27], %56 {strides = array<i32>} : memref<1x8x128xf32, #tpu.memory_space<vmem>>, vector<1x8x128xf32>,
    } else {
    }
    return
  }
  func.func @transform_0(%arg0: i32, %arg1: i32) -> (i32, i32, i32) {
    %c1_i32 = arith.constant 1 : i32
    %0 = arith.muli %arg0, %c1_i32 : i32
    %1 = arith.addi %0, %arg1 : i32
    %c0_i32 = arith.constant 0 : i32
    %c0_i32_0 = arith.constant 0 : i32
    %c0_i32_1 = arith.constant 0 : i32
    return %c0_i32, %1, %c0_i32_0 : i32, i32, i32
  }
  func.func @transform_1(%arg0: i32, %arg1: i32) -> (i32, i32) {
    %c1_i32 = arith.constant 1 : i32
    %0 = arith.muli %arg0, %c1_i32 : i32
    %1 = arith.addi %0, %arg1 : i32
    %c0_i32 = arith.constant 0 : i32
    %c0_i32_0 = arith.constant 0 : i32
    return %1, %c0_i32 : i32, i32
  }
  func.func @transform_2(%arg0: i32, %arg1: i32) -> (i32, i32, i32) {
    %c0_i32 = arith.constant 0 : i32
    %c0_i32_0 = arith.constant 0 : i32
    %c0_i32_1 = arith.constant 0 : i32
    return %arg0, %c0_i32, %c0_i32_0 : i32, i32, i32
  }
}

</mosaic_0001>

<bundles_post_ra>
// kernel: tpu_custom_call.1
= control target key start
LH: loop header
LB: loop body
LE: loop exit
PB: predicated region body
PF: predicated region fallthrough
CT: control target
= control target key end

     0   :  { %7 = vsyncpa [#allocation4], 0  ;;  %s406_s0 = inlined_call_operand.hbm [shape: f32[2,32,128], index: 0, kind: input, shape index: {}]   ;;  %s407_s1 = inlined_call_operand.hbm [shape: s8[32,128], index: 1, kind: input, shape index: {}]   ;;  %s408_s2 = inlined_call_operand.hbm [shape: f32[1,8,128], index: 2, kind: output, shape index: {}]  }
   0x1   :  { %8 = vsyncpa [#allocation7], 0 }
   0x2   :  { %9 = vsyncpa [#allocation5], 0  ;;  %s317_s9 = smov [#allocation3]   ;;  %s245_s13 = scalar_lea.hbm %s406_s0, 1024 }
   0x3   :  { %s19_s10 = sshll.u32 %s317_s9, 4  ;;  %p246_p0 = scmp.ne.s32.totalorder %s406_s0, %s245_s13  ;;  %s20_s10 = int_to_ptr.vmem [resolvable:$true] %s19_s10 }
   0x4   :  { %p249_p1 = scmp.lt.u32.totalorder %s245_s13, %s406_s0 }
   0x6   :  { %p251_p2 = pnand %p249_p1, %p246_p0 }
   0x8   :  { %254 = shalt.err (!%p251_p2)
}
   0x9   :  { %s255_s18 = scalar_lea.vmem %s20_s10, 1024  ;;  %p260_p4 = scmp.lt.s32.totalorder %s20_s10, %s20_s10 }
   0xa   :  { %p256_p3 = scmp.ne.s32.totalorder %s20_s10, %s255_s18  ;;  %p261_p5 = scmp.lt.s32.totalorder %s255_s18, %s255_s18 }
   0xc   :  { %p262_p6 = por %p261_p5, %p260_p4 }
   0xe   :  { %p263_p7 = pnand %p262_p6, %p256_p3 }
  0x10   :  { %266 = shalt.err (!%p263_p7)
}
  0x11   :  { %s318_s19 = smov 128   ;;  %s319_s20 = smov 8  }
  0x12   :  { %25 = dma.hbm_to_vmem [thread:$0]  %s406_s0, 1024, %s20_s10, [#allocation4], %s318_s19, %s318_s19, %s319_s20  }
  0x13   :  { %s320_s23 = smov [#allocation6]   ;;  %s267_s27 = scalar_lea.hbm %s407_s1, 128 }
  0x14   :  { %s35_s24 = sshll.u32 %s320_s23, 4  ;;  %p268_p8 = scmp.ne.s32.totalorder %s407_s1, %s267_s27  ;;  %s36_s24 = int_to_ptr.vmem [resolvable:$true] %s35_s24 }
  0x15   :  { %p271_p9 = scmp.lt.u32.totalorder %s267_s27, %s407_s1 }
  0x17   :  { %p273_p10 = pnand %p271_p9, %p268_p8 }
  0x19   :  { %276 = shalt.err (!%p273_p10)
}
  0x1a   :  { %s277_s4 = scalar_lea.vmem %s36_s24, 128  ;;  %p282_p12 = scmp.lt.s32.totalorder %s36_s24, %s36_s24 }
  0x1b   :  { %p278_p11 = scmp.ne.s32.totalorder %s36_s24, %s277_s4  ;;  %p283_p13 = scmp.lt.s32.totalorder %s277_s4, %s277_s4 }
  0x1d   :  { %p284_p0 = por %p283_p13, %p282_p12 }
  0x1f   :  { %p285_p1 = pnand %p284_p0, %p278_p11 }
  0x21   :  { %288 = shalt.err (!%p285_p1)
}
  0x22   :  { %38 = dma.hbm_to_vmem [thread:$0]  %s407_s1, 128, %s36_s24, [#allocation7]  }
  0x23   :  { %311 = dma.done.wait [#allocation4], 1024  }
  0x24   :  { %312 = vsyncadd [#allocation4], 4294966272 }
  0x25   :  { %313 = dma.done.wait [#allocation7], 128  }
  0x26   :  { %314 = vsyncadd [#allocation7], 4294967168  ;;  %v56_v0 = vld [vmem:[#allocation3] sm:$0xff]  ;;  %v57_v1 = vld [vmem:[#allocation3 + $0x8] sm:$0xff]  ;;  %s321_s1 = smov [#allocation8]  }
  0x27   :  { %v58_v2 = vld [vmem:[#allocation3 + $0x10] sm:$0xff]  ;;  %v59_v3 = vld [vmem:[#allocation3 + $0x18] sm:$0xff]  ;;  %v60_v4 = vld [vmem:[#allocation3 + $0x20] sm:$0xff]  ;;  %s204_s6 = sshll.u32 %s321_s1, 4  ;;  %s205_s6 = int_to_ptr.vmem [resolvable:$true] %s204_s6 }
  0x28   :  { %v61_v5 = vld [vmem:[#allocation3 + $0x28] sm:$0xff]  ;;  %v62_v6 = vld [vmem:[#allocation3 + $0x30] sm:$0xff]  ;;  %v63_v7 = vld [vmem:[#allocation3 + $0x38] sm:$0xff]  ;;  %v77_v9 = vsub.f32 %v56_v0, %v60_v4  ;;  %v81_v11 = vsub.f32 %v60_v4, %v56_v0  ;;  %s289_s8 = scalar_lea.vmem %s205_s6, 128  ;;  %p294_p3 = scmp.lt.s32.totalorder %s205_s6, %s205_s6 }
  0x29   :  { %v361_v8 = vld [vmem:[#allocation6] sm:$0xff]  ;;  %v78_v10 = vsub.f32 %v57_v1, %v61_v5  ;;  %v82_v12 = vsub.f32 %v61_v5, %v57_v1  ;;  %v79_v17 = vsub.f32 %v58_v2, %v62_v6  ;;  %v80_v18 = vsub.f32 %v59_v3, %v63_v7  ;;  %p290_p2 = scmp.ne.s32.totalorder %s205_s6, %s289_s8  ;;  %p295_p4 = scmp.lt.s32.totalorder %s289_s8, %s289_s8 }
  0x2a   :  { %v65_v13 = vunpack.c.0.s8 %v361_v8  ;;  %v66_v14 = vunpack.c.1.s8 %v361_v8  ;;  %v67_v15 = vunpack.c.2.s8 %v361_v8  ;;  %v68_v16 = vunpack.c.3.s8 %v361_v8 }
  0x2b   :  { %v83_v19 = vsub.f32 %v62_v6, %v58_v2  ;;  %v84_v20 = vsub.f32 %v63_v7, %v59_v3  ;;  %p296_p5 = por %p295_p4, %p294_p3 }
  0x2c   :  { %vm73_vm0 = vcmp.eq.s32.totalorder %v65_v13, 0  ;;  %vm74_vm1 = vcmp.eq.s32.totalorder %v66_v14, 0  ;;  %vm75_vm2 = vcmp.eq.s32.totalorder %v67_v15, 0  ;;  %vm76_vm3 = vcmp.eq.s32.totalorder %v68_v16, 0 }
  0x2d   :  { %v85_v21 = vsel %vm73_vm0, %v77_v9, %v81_v11  ;;  %v86_v22 = vsel %vm74_vm1, %v78_v10, %v82_v12  ;;  %v87_v23 = vsel %vm75_vm2, %v79_v17, %v83_v19  ;;  %v375_v24 = vsel %vm76_vm3, %v80_v18, %v84_v20  ;;  %p297_p6 = pnand %p296_p5, %p290_p2 }
  0x2e   :  { %v89_v25 = vand.u32 2147483647, %v85_v21  ;;  %v90_v26 = vand.u32 2147483647, %v86_v22  ;;  %v91_v27 = vand.u32 2147483647, %v87_v23 }
  0x2f   :  { %v92_v28 = vand.u32 2147483647, %v375_v24  ;;  %vm133_vm4 = vcmp.ge.f32.partialorder %v85_v21, 0.0  ;;  %vm134_vm5 = vcmp.ge.f32.partialorder %v86_v22, 0.0  ;;  %vm135_vm6 = vcmp.ge.f32.partialorder %v87_v23, 0.0 }
  0x30   :  { %v93_v29 = vsub.f32 0.0, %v89_v25  ;;  %v94_v30 = vsub.f32 0.0, %v90_v26  ;;  %v95_v31 = vsub.f32 0.0, %v91_v27  ;;  %vm136_vm7 = vcmp.ge.f32.partialorder %v375_v24, 0.0 }
  0x31   :  { %v96_v32 = vsub.f32 0.0, %v92_v28  ;;  %v113_v46 = vsub.f32 0.0, %v85_v21  ;;  %v114_v49 = vsub.f32 0.0, %v86_v22  ;;  %v115_v52 = vsub.f32 0.0, %v87_v23 }
  0x32   :  { %v97_v33 = vmul.f32 1.442695, %v93_v29  ;;  %v99_v34 = vmul.f32 1.442695, %v94_v30  ;;  %v101_v35 = vmul.f32 1.442695, %v95_v31 }
  0x33   :  { %v103_v36 = vmul.f32 1.442695, %v96_v32  ;;  %v116_v56 = vsub.f32 0.0, %v375_v24  ;;  %v117_v59 = vmax.f32 %v113_v46, 0.0  ;;  %vm382_vm8 = vcmp.ge.s32.totalorder %v65_v13, 0 }
  0x34   :  { %221 = vpow2.f32 %v97_v33  ;;  %v118_v0 = vmax.f32 %v114_v49, 0.0  ;;  %v119_v4 = vmax.f32 %v115_v52, 0.0  ;;  %vm70_vm9 = vcmp.ge.s32.totalorder %v66_v14, 0 }
  0x35   :  { %223 = vpow2.f32 %v99_v34  ;;  %v120_v10 = vmax.f32 %v116_v56, 0.0  ;;  %vm71_vm10 = vcmp.ge.s32.totalorder %v67_v15, 0  ;;  %vm72_vm11 = vcmp.ge.s32.totalorder %v68_v16, 0 }
  0x36   :  { %225 = vpow2.f32 %v101_v35 }
  0x37   :  { %227 = vpow2.f32 %v103_v36 }
  0x3e   :  { %v222_v37 = vpop.eup %221 }
  0x3f   :  { %v224_v38 = vpop.eup %223  ;;  %v105_v39 = vadd.f32 1.0, %v222_v37  ;;  %v137_v45 = vsel %vm133_vm4, 1.0, %v222_v37 }
  0x40   :  { %v226_v40 = vpop.eup %225  ;;  %v106_v41 = vadd.f32 1.0, %v224_v38  ;;  %v138_v47 = vsel %vm134_vm5, 1.0, %v224_v38 }
  0x41   :  { %v228_v42 = vpop.eup %227  ;;  %v107_v43 = vadd.f32 1.0, %v226_v40  ;;  %229 = vrcp.f32 %v105_v39  ;;  %v139_v50 = vsel %vm135_vm6, 1.0, %v226_v40 }
  0x42   :  { %v108_v44 = vadd.f32 1.0, %v228_v42  ;;  %231 = vrcp.f32 %v106_v41  ;;  %v140_v53 = vsel %vm136_vm7, 1.0, %v228_v42 }
  0x43   :  { %233 = vrcp.f32 %v107_v43 }
  0x44   :  { %235 = vrcp.f32 %v108_v44 }
  0x45   :  { %237 = vlog2.f32 %v105_v39 }
  0x46   :  { %239 = vlog2.f32 %v106_v41 }
  0x47   :  { %241 = vlog2.f32 %v107_v43 }
  0x48   :  { %243 = vlog2.f32 %v108_v44 }
  0x4b   :  { %v230_v48 = vpop.eup %229 }
  0x4c   :  { %v232_v51 = vpop.eup %231  ;;  %v141_v54 = vmul.f32 %v230_v48, %v137_v45 }
  0x4d   :  { %v234_v55 = vpop.eup %233  ;;  %v142_v57 = vmul.f32 %v232_v51, %v138_v47 }
  0x4e   :  { %v236_v58 = vpop.eup %235  ;;  %v143_v60 = vmul.f32 %v234_v55, %v139_v50  ;;  %v145_v61 = vsub.f32 1.0, %v141_v54 }
  0x4f   :  { %v238_v62 = vpop.eup %237  ;;  %v144_v1 = vmul.f32 %v236_v58, %v140_v53  ;;  %v146_v2 = vsub.f32 1.0, %v142_v57 }
  0x50   :  { %v240_v3 = vpop.eup %239  ;;  %v122_v5 = vmul.f32 0.6931472, %v238_v62  ;;  %v147_v6 = vsub.f32 1.0, %v143_v60  ;;  %v149_v7 = vmax.f32 %v145_v61, 0.0 }
  0x51   :  { %v242_v9 = vpop.eup %241  ;;  %v124_v11 = vmul.f32 0.6931472, %v240_v3  ;;  %v148_v12 = vsub.f32 1.0, %v144_v1  ;;  %v150_v17 = vmax.f32 %v146_v2, 0.0 }
  0x52   :  { %v244_v18 = vpop.eup %243  ;;  %v126_v19 = vmul.f32 0.6931472, %v242_v9  ;;  %v129_v20 = vadd.f32 %v122_v5, %v117_v59  ;;  %v151_v13 = vmax.f32 %v147_v6, 0.0  ;;  %v153_v21 = vmul.f32 %v149_v7, %v149_v7 }
  0x53   :  { %v128_v22 = vmul.f32 0.6931472, %v244_v18  ;;  %v130_v23 = vadd.f32 %v124_v11, %v118_v0  ;;  %v152_v24 = vmax.f32 %v148_v12, 0.0  ;;  %v154_v25 = vmul.f32 %v150_v17, %v150_v17 }
  0x54   :  { %v131_v26 = vadd.f32 %v126_v19, %v119_v4  ;;  %v155_v27 = vmul.f32 %v151_v13, %v151_v13  ;;  %v157_v28 = vmul.f32 %v153_v21, %v129_v20 }
  0x55   :  { %v132_v29 = vadd.f32 %v128_v22, %v120_v10  ;;  %v156_v30 = vmul.f32 %v152_v24, %v152_v24  ;;  %v158_v31 = vmul.f32 %v154_v25, %v130_v23 }
  0x56   :  { %v159_v32 = vmul.f32 %v155_v27, %v131_v26  ;;  %v161_v33 = vsel %vm382_vm8, %v157_v28, 0.0 }
  0x57   :  { %v160_v34 = vmul.f32 %v156_v30, %v132_v29  ;;  %v162_v35 = vsel %vm70_vm9, %v158_v31, 0.0 }
  0x58   :  { %v163_v36 = vsel %vm71_vm10, %v159_v32, 0.0  ;;  %v184_v14 = vadd.f32 %v162_v35, %v161_v33 }
  0x59   :  { %v164_v37 = vsel %vm72_vm11, %v160_v34, 0.0 }
  0x5a   :  { %v185_v38 = vadd.f32 %v184_v14, %v163_v36 }
  0x5c   :  { %v186_v39 = vadd.f32 %v185_v38, %v164_v37 }
  0x5e   :  { %187 = vadd.xlane.f32.xlu0 %v186_v39 }
  0xeb   :  { %v188_v40 = vpop.xlane.xlu0 %187 }
  0xec   :  { %v189_v15 = vrot.slane %v188_v40, 4 }
  0xee   :  { %v190_v41 = vadd.f32 %v189_v15, %v188_v40 }
  0xf0   :  { %v191_v42 = vrot.slane %v190_v41, 2 }
  0xf2   :  { %v192_v43 = vadd.f32 %v191_v42, %v190_v41 }
  0xf4   :  { %v193_v44 = vrot.slane %v192_v43, 1 }
  0xf6   :  { %v194_v8 = vadd.f32 %v193_v44, %v192_v43 }
  0xf8   :  { %214 = vpush %v194_v8 }
 0x129   :  { %s215_s7 = spop %214 }
 0x12a   :  { %v196_v16 = vstv %s215_s7 }
 0x12b   :  { %197 = vst [vmem:[#allocation8] sm:$0xff] %v196_v16 }
 0x12c   :  { %300 = shalt.err (!%p297_p6)
}
 0x12d   :  { %s301_s11 = scalar_lea.hbm %s408_s2, 128 }
 0x12e   :  { %p302_p7 = scmp.ne.s32.totalorder %s408_s2, %s301_s11  ;;  %p305_p8 = scmp.lt.u32.totalorder %s301_s11, %s408_s2 }
 0x130   :  { %p307_p9 = pnand %p305_p8, %p302_p7 }
 0x132   :  { %310 = shalt.err (!%p307_p9)
}
 0x133   :  { %207 = dma.vmem_to_hbm [thread:$0]  %s205_s6, 128, %s408_s2, [#allocation5]  }
 0x134   :  { %315 = dma.done.wait [#allocation5], 128  }
 0x135   :  { %316 = vsyncadd [#allocation5], 4294967168 }
 0x136   :  { %211 = vsyncpa [#allocation4], 1 }
 0x137   :  { %212 = vsyncpa [#allocation7], 1 }
 0x138   :  { %213 = vsyncpa [#allocation5], 1 }

</bundles_post_ra>
